<compile_context>
chip_gen: v6e
topology: v6e:2x2x1
jax: 0.10.0
libtpu: 0.0.40
codegen_flags: <defaults>
</compile_context>

<pallas_src>
import functools

import jax
import jax.numpy as jnp
from jax.experimental import pallas as pl
from jax.experimental.pallas import tpu as pltpu

NUM_LAYERS = 5
SIZE = 101          # inputSize = internalSize = outputSize = 101
NUM_STEPS = 10      # linspace points -> NUM_STEPS - 1 histogram bins
_OUT_LANES = 128    # lane-dense output row width


def _loss_from_colsums(cs):
    """cs: (L, S) f32 column sums (torch sum over dim 0 of each layer weight).

    Returns the scalar StructureLoss for one model instance.  Only VPU
    elementwise work plus one max reduce and one count reduce.
    """
    L, S = cs.shape
    zeros = jnp.zeros((1, S), jnp.float32)
    # totalStrength as ONE (L+1, S) tensor: row0=c0, row i=c_{i-1}+c_i, rowL=c_{L-1}
    total = (jnp.concatenate([zeros, cs], axis=0)
             + jnp.concatenate([cs, zeros], axis=0))
    max_val = jnp.max(total)                      # minVal is 0.0 in the reference
    step = max_val / float(NUM_STEPS - 1)         # torch.linspace step = (max-0)/9
    acc = jnp.zeros_like(total)
    for i in range(NUM_STEPS - 1):                # thresholds hoisted per bin
        lo = step * float(i)
        hi = step * float(i + 1)
        between = (total > lo) == (total < hi)    # keep torch `==` semantics
        acc = acc + between.astype(jnp.float32)
    count = jnp.sum(acc)                          # single count reduction
    n = float((L + 1) * S)
    # sum_i (count_i / n + 1) == count / n + (NUM_STEPS - 1)
    return count / n + float(NUM_STEPS - 1)


def _structure_loss_kernel(w_ref, out_ref):
    # w_ref: (L, S, S) f32 in VMEM ; out_ref: (1, 1) f32 in SMEM.
    cs = jnp.sum(w_ref[...], axis=1)              # (L, S): sum over torch dim 0
    out_ref[0, 0] = _loss_from_colsums(cs)


def _structure_loss_block_kernel(w_ref, out_ref, *, block_b):
    # w_ref: (BB, L, S, S) f32 in VMEM ; out_ref: (1, 1, 128) f32 in VMEM.
    lane = jax.lax.broadcasted_iota(jnp.int32, (1, 1, _OUT_LANES), 2)
    out_vec = jnp.zeros((1, 1, _OUT_LANES), jnp.float32)
    for j in range(block_b):
        cs = jnp.sum(w_ref[j], axis=1)            # (L, S)
        loss_j = _loss_from_colsums(cs)
        out_vec = jnp.where(lane == j, loss_j, out_vec)
    out_ref[...] = out_vec                        # one lane-dense store per step


def structure_loss(weights):
    """weights: f32[L, out, in] stacked nn.Linear weights -> scalar loss.

    Single-instance path (the literal StructureLoss.forward(model) case).  It is
    fixed-overhead bound (~one 204KB DMA); use the batched path for throughput.
    """
    weights = weights.astype(jnp.float32)
    res = pl.pallas_call(
        _structure_loss_kernel,
        out_shape=jax.ShapeDtypeStruct((1, 1), jnp.float32),
        in_specs=[pl.BlockSpec(memory_space=pltpu.MemorySpace.VMEM)],
        out_specs=pl.BlockSpec(memory_space=pltpu.MemorySpace.SMEM),
    )(weights)
    return res[0, 0]


def structure_loss_batched(weights_batched, block_b=16):
    """weights_batched: f32[B, L, out, in] -> f32[B] losses (one per weight stack).

    BB = block_b instances per grid step amortize the per-step fixed cost;
    block_b must be <= 128 (losses are packed into output lanes).  The default
    of 16 keeps the double-buffered input block ~6.5MB, within every
    generation's default scoped-VMEM limit (no vmem_limit_bytes override needed).
    """
    weights_batched = weights_batched.astype(jnp.float32)
    B, L, S_out, S_in = weights_batched.shape
    bb = int(max(1, min(block_b, B, _OUT_LANES)))
    num_blocks = -(-B // bb)
    b_pad = num_blocks * bb
    w = weights_batched
    if b_pad != B:
        # Zero-pad to a whole number of blocks; padded losses are sliced off below.
        w = jnp.pad(w, ((0, b_pad - B), (0, 0), (0, 0), (0, 0)))

    out = pl.pallas_call(
        functools.partial(_structure_loss_block_kernel, block_b=bb),
        out_shape=jax.ShapeDtypeStruct((num_blocks, 1, _OUT_LANES), jnp.float32),
        grid=(num_blocks,),
        in_specs=[pl.BlockSpec((bb, L, S_out, S_in), lambda b: (b, 0, 0, 0))],
        out_specs=pl.BlockSpec((1, 1, _OUT_LANES), lambda b: (b, 0, 0)),
        compiler_params=pltpu.CompilerParams(
            dimension_semantics=("parallel",)),   # v7x: 2 TCs split the blocks
    )(w)
    return out[:, 0, :bb].reshape(-1)[:B]


def structure_loss_ref(weights):
    """Pure-JAX mirror of the PyTorch reference (for verification)."""
    weights = weights.astype(jnp.float32)
    colsum = jnp.sum(weights, axis=1)                         # (L, in)
    zero = jnp.zeros((1, weights.shape[2]), jnp.float32)
    total = (jnp.concatenate([zero, colsum], axis=0)
             + jnp.concatenate([colsum, zero], axis=0)).reshape(-1)
    max_val = jnp.max(total)
    n = float(total.shape[0])
    step = max_val / float(NUM_STEPS - 1)
    loss = jnp.float32(0.0)
    for i in range(NUM_STEPS - 1):
        lo = step * float(i)
        hi = step * float(i + 1)
        between = (total > lo) == (total < hi)
        loss = loss + jnp.sum(between.astype(jnp.float32)) / n + 1.0
    return loss


if __name__ == "__main__":
    keys = jax.random.split(jax.random.PRNGKey(0), 2)
    bound = 1.0 / (SIZE ** 0.5)        # PyTorch-default-like uniform init scale

    # Single model instance.
    weights = jax.random.uniform(
        keys[0], (NUM_LAYERS, SIZE, SIZE), dtype=jnp.float32,
        minval=-bound, maxval=bound)
    loss = jax.block_until_ready(structure_loss(weights))
    expected = structure_loss_ref(weights)
    assert abs(float(loss) - float(expected)) < 5e-3, (float(loss), float(expected))

    # Block-batched path: 24 weight stacks, BB=16 -> grid=(2,) (even #steps for v7x),
    # second block exercises the zero-padding path.
    B = 24
    wb = jax.random.uniform(
        keys[1], (B, NUM_LAYERS, SIZE, SIZE), dtype=jnp.float32,
        minval=-bound, maxval=bound)
    losses = jax.block_until_ready(structure_loss_batched(wb, block_b=16))
    assert losses.shape == (B,)
    for b in range(B):
        eb = structure_loss_ref(wb[b])
        assert abs(float(losses[b]) - float(eb)) < 5e-3, (b, float(losses[b]), float(eb))

    print("KERNEL_OK")
</pallas_src>

<mosaic_0001>
module attributes {stable_mosaic.version = 11 : i64} {
  func.func @_structure_loss_kernel(%arg0: memref<5x101x101xf32, #tpu.memory_space<vmem>>, %arg1: memref<1x1xf32, #tpu.memory_space<smem>>) attributes {dimension_semantics = [], scalar_prefetch = 0 : i64, scratch_operands = 0 : i64, tpu.core_type = #tpu.core_type<tc>} {
    %c0 = arith.constant 0 : index
    %c0_0 = arith.constant 0 : index
    %c0_1 = arith.constant 0 : index
    %0 = vector.load %arg0[%c0, %c0_0, %c0_1] : memref<5x101x101xf32, #tpu.memory_space<vmem>>, vector<5x101x101xf32>
    %cst = arith.constant dense<0.000000e+00> : vector<5x101xf32>
    %1 = vector.multi_reduction <add>, %0, %cst [1] : vector<5x101x101xf32> to vector<5x101xf32>
    %cst_2 = arith.constant 0.000000e+00 : f32
    %2 = vector.broadcast %cst_2 : f32 to vector<1x101xf32>
    %3 = tpu.concatenate %2, %1 in 0 : vector<1x101xf32>, vector<5x101xf32> -> vector<6x101xf32>
    %4 = tpu.concatenate %1, %2 in 0 : vector<5x101xf32>, vector<1x101xf32> -> vector<6x101xf32>
    %5 = arith.addf %3, %4 : vector<6x101xf32>
    %6 = vector.shape_cast %5 : vector<6x101xf32> to vector<1x6x101xf32>
    %cst_3 = arith.constant dense<0xFF800000> : vector<1xf32>
    %7 = vector.multi_reduction <maximumf>, %6, %cst_3 [1, 2] : vector<1x6x101xf32> to vector<1xf32>
    %8 = vector.shape_cast %7 : vector<1xf32> to vector<1x1x1xf32>
    %9 = vector.extract %8[0, 0, 0] : f32 from vector<1x1x1xf32>
    %cst_4 = arith.constant 9.000000e+00 : f32
    %10 = arith.divf %9, %cst_4 : f32
    %cst_5 = arith.constant 0.000000e+00 : f32
    %11 = vector.broadcast %cst_5 : f32 to vector<6x101xf32>
    %cst_6 = arith.constant 0.000000e+00 : f32
    %12 = arith.mulf %10, %cst_6 : f32
    %cst_7 = arith.constant 1.000000e+00 : f32
    %13 = arith.mulf %10, %cst_7 : f32
    %14 = vector.broadcast %12 : f32 to vector<6x101xf32>
    %15 = arith.cmpf ogt, %5, %14 : vector<6x101xf32>
    %16 = vector.broadcast %13 : f32 to vector<6x101xf32>
    %17 = arith.cmpf olt, %5, %16 : vector<6x101xf32>
    %18 = arith.xori %15, %17 : vector<6x101xi1>
    %cst_8 = arith.constant dense<true> : vector<6x101xi1>
    %19 = arith.xori %18, %cst_8 : vector<6x101xi1>
    %20 = arith.extui %19 : vector<6x101xi1> to vector<6x101xi32>
    %21 = arith.sitofp %20 : vector<6x101xi32> to vector<6x101xf32>
    %22 = arith.addf %11, %21 : vector<6x101xf32>
    %cst_9 = arith.constant 1.000000e+00 : f32
    %23 = arith.mulf %10, %cst_9 : f32
    %cst_10 = arith.constant 2.000000e+00 : f32
    %24 = arith.mulf %10, %cst_10 : f32
    %25 = vector.broadcast %23 : f32 to vector<6x101xf32>
    %26 = arith.cmpf ogt, %5, %25 : vector<6x101xf32>
    %27 = vector.broadcast %24 : f32 to vector<6x101xf32>
    %28 = arith.cmpf olt, %5, %27 : vector<6x101xf32>
    %29 = arith.xori %26, %28 : vector<6x101xi1>
    %cst_11 = arith.constant dense<true> : vector<6x101xi1>
    %30 = arith.xori %29, %cst_11 : vector<6x101xi1>
    %31 = arith.extui %30 : vector<6x101xi1> to vector<6x101xi32>
    %32 = arith.sitofp %31 : vector<6x101xi32> to vector<6x101xf32>
    %33 = arith.addf %22, %32 : vector<6x101xf32>
    %cst_12 = arith.constant 2.000000e+00 : f32
    %34 = arith.mulf %10, %cst_12 : f32
    %cst_13 = arith.constant 3.000000e+00 : f32
    %35 = arith.mulf %10, %cst_13 : f32
    %36 = vector.broadcast %34 : f32 to vector<6x101xf32>
    %37 = arith.cmpf ogt, %5, %36 : vector<6x101xf32>
    %38 = vector.broadcast %35 : f32 to vector<6x101xf32>
    %39 = arith.cmpf olt, %5, %38 : vector<6x101xf32>
    %40 = arith.xori %37, %39 : vector<6x101xi1>
    %cst_14 = arith.constant dense<true> : vector<6x101xi1>
    %41 = arith.xori %40, %cst_14 : vector<6x101xi1>
    %42 = arith.extui %41 : vector<6x101xi1> to vector<6x101xi32>
    %43 = arith.sitofp %42 : vector<6x101xi32> to vector<6x101xf32>
    %44 = arith.addf %33, %43 : vector<6x101xf32>
    %cst_15 = arith.constant 3.000000e+00 : f32
    %45 = arith.mulf %10, %cst_15 : f32
    %cst_16 = arith.constant 4.000000e+00 : f32
    %46 = arith.mulf %10, %cst_16 : f32
    %47 = vector.broadcast %45 : f32 to vector<6x101xf32>
    %48 = arith.cmpf ogt, %5, %47 : vector<6x101xf32>
    %49 = vector.broadcast %46 : f32 to vector<6x101xf32>
    %50 = arith.cmpf olt, %5, %49 : vector<6x101xf32>
    %51 = arith.xori %48, %50 : vector<6x101xi1>
    %cst_17 = arith.constant dense<true> : vector<6x101xi1>
    %52 = arith.xori %51, %cst_17 : vector<6x101xi1>
    %53 = arith.extui %52 : vector<6x101xi1> to vector<6x101xi32>
    %54 = arith.sitofp %53 : vector<6x101xi32> to vector<6x101xf32>
    %55 = arith.addf %44, %54 : vector<6x101xf32>
    %cst_18 = arith.constant 4.000000e+00 : f32
    %56 = arith.mulf %10, %cst_18 : f32
    %cst_19 = arith.constant 5.000000e+00 : f32
    %57 = arith.mulf %10, %cst_19 : f32
    %58 = vector.broadcast %56 : f32 to vector<6x101xf32>
    %59 = arith.cmpf ogt, %5, %58 : vector<6x101xf32>
    %60 = vector.broadcast %57 : f32 to vector<6x101xf32>
    %61 = arith.cmpf olt, %5, %60 : vector<6x101xf32>
    %62 = arith.xori %59, %61 : vector<6x101xi1>
    %cst_20 = arith.constant dense<true> : vector<6x101xi1>
    %63 = arith.xori %62, %cst_20 : vector<6x101xi1>
    %64 = arith.extui %63 : vector<6x101xi1> to vector<6x101xi32>
    %65 = arith.sitofp %64 : vector<6x101xi32> to vector<6x101xf32>
    %66 = arith.addf %55, %65 : vector<6x101xf32>
    %cst_21 = arith.constant 5.000000e+00 : f32
    %67 = arith.mulf %10, %cst_21 : f32
    %cst_22 = arith.constant 6.000000e+00 : f32
    %68 = arith.mulf %10, %cst_22 : f32
    %69 = vector.broadcast %67 : f32 to vector<6x101xf32>
    %70 = arith.cmpf ogt, %5, %69 : vector<6x101xf32>
    %71 = vector.broadcast %68 : f32 to vector<6x101xf32>
    %72 = arith.cmpf olt, %5, %71 : vector<6x101xf32>
    %73 = arith.xori %70, %72 : vector<6x101xi1>
    %cst_23 = arith.constant dense<true> : vector<6x101xi1>
    %74 = arith.xori %73, %cst_23 : vector<6x101xi1>
    %75 = arith.extui %74 : vector<6x101xi1> to vector<6x101xi32>
    %76 = arith.sitofp %75 : vector<6x101xi32> to vector<6x101xf32>
    %77 = arith.addf %66, %76 : vector<6x101xf32>
    %cst_24 = arith.constant 6.000000e+00 : f32
    %78 = arith.mulf %10, %cst_24 : f32
    %cst_25 = arith.constant 7.000000e+00 : f32
    %79 = arith.mulf %10, %cst_25 : f32
    %80 = vector.broadcast %78 : f32 to vector<6x101xf32>
    %81 = arith.cmpf ogt, %5, %80 : vector<6x101xf32>
    %82 = vector.broadcast %79 : f32 to vector<6x101xf32>
    %83 = arith.cmpf olt, %5, %82 : vector<6x101xf32>
    %84 = arith.xori %81, %83 : vector<6x101xi1>
    %cst_26 = arith.constant dense<true> : vector<6x101xi1>
    %85 = arith.xori %84, %cst_26 : vector<6x101xi1>
    %86 = arith.extui %85 : vector<6x101xi1> to vector<6x101xi32>
    %87 = arith.sitofp %86 : vector<6x101xi32> to vector<6x101xf32>
    %88 = arith.addf %77, %87 : vector<6x101xf32>
    %cst_27 = arith.constant 7.000000e+00 : f32
    %89 = arith.mulf %10, %cst_27 : f32
    %cst_28 = arith.constant 8.000000e+00 : f32
    %90 = arith.mulf %10, %cst_28 : f32
    %91 = vector.broadcast %89 : f32 to vector<6x101xf32>
    %92 = arith.cmpf ogt, %5, %91 : vector<6x101xf32>
    %93 = vector.broadcast %90 : f32 to vector<6x101xf32>
    %94 = arith.cmpf olt, %5, %93 : vector<6x101xf32>
    %95 = arith.xori %92, %94 : vector<6x101xi1>
    %cst_29 = arith.constant dense<true> : vector<6x101xi1>
    %96 = arith.xori %95, %cst_29 : vector<6x101xi1>
    %97 = arith.extui %96 : vector<6x101xi1> to vector<6x101xi32>
    %98 = arith.sitofp %97 : vector<6x101xi32> to vector<6x101xf32>
    %99 = arith.addf %88, %98 : vector<6x101xf32>
    %cst_30 = arith.constant 8.000000e+00 : f32
    %100 = arith.mulf %10, %cst_30 : f32
    %cst_31 = arith.constant 9.000000e+00 : f32
    %101 = arith.mulf %10, %cst_31 : f32
    %102 = vector.broadcast %100 : f32 to vector<6x101xf32>
    %103 = arith.cmpf ogt, %5, %102 : vector<6x101xf32>
    %104 = vector.broadcast %101 : f32 to vector<6x101xf32>
    %105 = arith.cmpf olt, %5, %104 : vector<6x101xf32>
    %106 = arith.xori %103, %105 : vector<6x101xi1>
    %cst_32 = arith.constant dense<true> : vector<6x101xi1>
    %107 = arith.xori %106, %cst_32 : vector<6x101xi1>
    %108 = arith.extui %107 : vector<6x101xi1> to vector<6x101xi32>
    %109 = arith.sitofp %108 : vector<6x101xi32> to vector<6x101xf32>
    %110 = arith.addf %99, %109 : vector<6x101xf32>
    %111 = vector.shape_cast %110 : vector<6x101xf32> to vector<1x6x101xf32>
    %cst_33 = arith.constant dense<0.000000e+00> : vector<1xf32>
    %112 = vector.multi_reduction <add>, %111, %cst_33 [1, 2] : vector<1x6x101xf32> to vector<1xf32>
    %113 = vector.shape_cast %112 : vector<1xf32> to vector<1x1x1xf32>
    %114 = vector.extract %113[0, 0, 0] : f32 from vector<1x1x1xf32>
    %cst_34 = arith.constant 6.060000e+02 : f32
    %115 = arith.divf %114, %cst_34 : f32
    %cst_35 = arith.constant 9.000000e+00 : f32
    %116 = arith.addf %115, %cst_35 : f32
    %c0_36 = arith.constant 0 : index
    %c0_37 = arith.constant 0 : index
    %117 = memref.load %arg1[%c0_36, %c0_37] : memref<1x1xf32, #tpu.memory_space<smem>>
    memref.store %116, %arg1[%c0_36, %c0_37] : memref<1x1xf32, #tpu.memory_space<smem>>
    return
  }
}

</mosaic_0001>

<bundles_post_ra>
// kernel: tpu_custom_call.1
= control target key start
LH: loop header
LB: loop body
LE: loop exit
PB: predicated region body
PF: predicated region fallthrough
CT: control target
= control target key end

     0   :  { %6 = vsyncpa [#allocation3], 0  ;;  %s578_s0 = inlined_call_operand.hbm [shape: f32[5,101,101], index: 0, kind: input, shape index: {}]   ;;  %s579_s1 = inlined_call_operand.hbm [shape: f32[1,1], index: 1, kind: output, shape index: {}]  }
   0x1   :  { %7 = vsyncpa [#allocation4], 0  ;;  %s447_s6 = smov [#allocation2]  }
   0x2   :  { %s13_s7 = sshll.u32 %s447_s6, 4  ;;  %s14_s7 = int_to_ptr.vmem [resolvable:$true] %s13_s7 }
   0x3   :  { %s423_s8 = scalar_lea.vmem %s14_s7, 8320  ;;  %p428_p1 = scmp.lt.s32.totalorder %s14_s7, %s14_s7 }
   0x4   :  { %p424_p0 = scmp.ne.s32.totalorder %s14_s7, %s423_s8  ;;  %p429_p2 = scmp.lt.s32.totalorder %s423_s8, %s423_s8 }
   0x6   :  { %p430_p3 = por %p429_p2, %p428_p1 }
   0x8   :  { %p431_p4 = pnand %p430_p3, %p424_p0 }
   0xa   :  { %434 = shalt.err (!%p431_p4)
}
   0xb   :  { %s448_s9 = smov 128   ;;  %s449_s10 = smov 8  }
   0xc   :  { %19 = dma.hbm_to_vmem [thread:$0]  %s578_s0, 8320, %s14_s7, [#allocation3], %s448_s9, %s448_s9, %s449_s10  }
   0xd   :  { %443 = dma.done.wait [#allocation3], 8320  }
   0xe   :  { %444 = vsyncadd [#allocation3], 4294958976  ;;  %vm88_vm0 = vcmask 826368   ;;  %v23_v0 = vld [vmem:[#allocation2] sm:$0xff]  ;;  %v24_v1 = vld [vmem:[#allocation2 + $0x8] sm:$0xff]  ;;  %vm112_vm1 = vcmask 823296  }
   0xf   :  { %v25_v2 = vld [vmem:[#allocation2 + $0x10] sm:$0xff]  ;;  %v26_v3 = vld [vmem:[#allocation2 + $0x18] sm:$0xff]  ;;  %v89_v4 = vsel %vm88_vm0, %v23_v0, 0.0  ;;  %v90_v5 = vsel %vm88_vm0, %v24_v1, 0.0  ;;  %v27_v7 = vld [vmem:[#allocation2 + $0x20] sm:$0xff]  ;;  %vm250_vm2 = vcmask 1042434  }
  0x10   :  { %v92_v6 = vsel %vm88_vm0, %v25_v2, 0.0  ;;  %v91_v8 = vadd.f32 %v90_v5, %v89_v4  ;;  %v94_v9 = vsel %vm88_vm0, %v26_v3, 0.0  ;;  %v28_v10 = vld [vmem:[#allocation2 + $0x28] sm:$0xff]  ;;  %v37_v12 = vld [vmem:[#allocation2 + $0x70] sm:$0xff]  ;;  %v38_v15 = vld [vmem:[#allocation2 + $0x78] sm:$0xff]  ;;  %v96_v17 = vsel %vm88_vm0, %v27_v7, 0.0 }
  0x11   :  { %v36_v11 = vld [vmem:[#allocation2 + $0x68] sm:$0xff]  ;;  %v29_v14 = vld [vmem:[#allocation2 + $0x30] sm:$0xff]  ;;  %v39_v16 = vld [vmem:[#allocation2 + $0x80] sm:$0xff]  ;;  %v122_v23 = vsel %vm88_vm0, %v37_v12, 0.0  ;;  %v124_v24 = vsel %vm88_vm0, %v38_v15, 0.0  ;;  %v98_v27 = vsel %vm88_vm0, %v28_v10, 0.0 }
  0x12   :  { %v93_v13 = vadd.f32 %v92_v6, %v91_v8  ;;  %v121_v18 = vsel %vm88_vm0, %v36_v11, 0.0  ;;  %v30_v19 = vld [vmem:[#allocation2 + $0x38] sm:$0xff]  ;;  %v31_v20 = vld [vmem:[#allocation2 + $0x40] sm:$0xff]  ;;  %v32_v21 = vld [vmem:[#allocation2 + $0x48] sm:$0xff]  ;;  %v100_v33 = vsel %vm88_vm0, %v29_v14, 0.0  ;;  %v126_v34 = vsel %vm88_vm0, %v39_v16, 0.0 }
  0x13   :  { %v33_v25 = vld [vmem:[#allocation2 + $0x50] sm:$0xff]  ;;  %v40_v26 = vld [vmem:[#allocation2 + $0x88] sm:$0xff]  ;;  %v123_v28 = vadd.f32 %v122_v23, %v121_v18  ;;  %v34_v29 = vld [vmem:[#allocation2 + $0x58] sm:$0xff]  ;;  %v102_v38 = vsel %vm88_vm0, %v30_v19, 0.0  ;;  %v104_v39 = vsel %vm88_vm0, %v31_v20, 0.0  ;;  %v106_v40 = vsel %vm88_vm0, %v32_v21, 0.0 }
  0x14   :  { %v95_v22 = vadd.f32 %v94_v9, %v93_v13  ;;  %v41_v30 = vld [vmem:[#allocation2 + $0x90] sm:$0xff]  ;;  %v50_v35 = vld [vmem:[#allocation2 + $0xd8] sm:$0xff]  ;;  %v51_v36 = vld [vmem:[#allocation2 + $0xe0] sm:$0xff]  ;;  %v128_v45 = vsel %vm88_vm0, %v40_v26, 0.0  ;;  %v108_v51 = vsel %vm88_vm0, %v33_v25, 0.0  ;;  %v110_v58 = vsel %vm88_vm0, %v34_v29, 0.0 }
  0x15   :  { %v49_v31 = vld [vmem:[#allocation2 + $0xd0] sm:$0xff]  ;;  %v52_v37 = vld [vmem:[#allocation2 + $0xe8] sm:$0xff]  ;;  %v125_v41 = vadd.f32 %v124_v24, %v123_v28  ;;  %v35_v42 = vld [vmem:[#allocation2 + $0x60] sm:$0x1f]  ;;  %v153_v47 = vsel %vm88_vm0, %v50_v35, 0.0  ;;  %v155_v54 = vsel %vm88_vm0, %v51_v36, 0.0 }
  0x16   :  { %v97_v32 = vadd.f32 %v96_v17, %v95_v22  ;;  %v42_v43 = vld [vmem:[#allocation2 + $0x98] sm:$0xff]  ;;  %v152_v46 = vsel %vm88_vm0, %v49_v31, 0.0  ;;  %v43_v48 = vld [vmem:[#allocation2 + $0xa0] sm:$0xff]  ;;  %v44_v49 = vld [vmem:[#allocation2 + $0xa8] sm:$0xff]  ;;  %v130_v59 = vsel %vm88_vm0, %v41_v30, 0.0  ;;  %v157_v60 = vsel %vm88_vm0, %v52_v37, 0.0 }
  0x17   :  { %v53_v50 = vld [vmem:[#allocation2 + $0xf0] sm:$0xff]  ;;  %v127_v52 = vadd.f32 %v126_v34, %v125_v41  ;;  %v154_v53 = vadd.f32 %v153_v47, %v152_v46  ;;  %v54_v56 = vld [vmem:[#allocation2 + $0xf8] sm:$0xff]  ;;  %v63_v62 = vld [vmem:[#allocation2 + $0x140] sm:$0xff]  ;;  %v113_v0 = vsel %vm112_vm1, %v35_v42, 0.0  ;;  %v132_v2 = vsel %vm88_vm0, %v42_v43, 0.0  ;;  %s452_s26 = smov [#allocation5]  }
  0x18   :  { %v99_v44 = vadd.f32 %v98_v27, %v97_v32  ;;  %v45_v55 = vld [vmem:[#allocation2 + $0xb0] sm:$0xff]  ;;  %v62_v61 = vld [vmem:[#allocation2 + $0x138] sm:$0xff]  ;;  %v64_v63 = vld [vmem:[#allocation2 + $0x148] sm:$0xff]  ;;  %v134_v6 = vsel %vm88_vm0, %v43_v48, 0.0  ;;  %v136_v7 = vsel %vm88_vm0, %v44_v49, 0.0  ;;  %v159_v8 = vsel %vm88_vm0, %v53_v50, 0.0 }
  0x19   :  { %v129_v1 = vadd.f32 %v128_v45, %v127_v52  ;;  %v156_v3 = vadd.f32 %v155_v54, %v154_v53  ;;  %v46_v4 = vld [vmem:[#allocation2 + $0xb8] sm:$0xff]  ;;  %v47_v9 = vld [vmem:[#allocation2 + $0xc0] sm:$0xff]  ;;  %v65_v11 = vld [vmem:[#allocation2 + $0x150] sm:$0xff]  ;;  %v138_v13 = vsel %vm88_vm0, %v45_v55, 0.0  ;;  %v161_v15 = vsel %vm88_vm0, %v54_v56, 0.0 }
  0x1a   :  { %v101_v57 = vadd.f32 %v100_v33, %v99_v44  ;;  %v55_v10 = vld [vmem:[#allocation2 + $0x100] sm:$0xff]  ;;  %v48_v16 = vld [vmem:[#allocation2 + $0xc8] sm:$0x1f]  ;;  %v183_v18 = vsel %vm88_vm0, %v62_v61, 0.0  ;;  %v184_v19 = vsel %vm88_vm0, %v63_v62, 0.0  ;;  %v186_v20 = vsel %vm88_vm0, %v64_v63, 0.0 }
  0x1b   :  { %v131_v12 = vadd.f32 %v130_v59, %v129_v1  ;;  %v158_v14 = vadd.f32 %v157_v60, %v156_v3  ;;  %v56_v21 = vld [vmem:[#allocation2 + $0x108] sm:$0xff]  ;;  %v57_v22 = vld [vmem:[#allocation2 + $0x110] sm:$0xff]  ;;  %v66_v23 = vld [vmem:[#allocation2 + $0x158] sm:$0xff]  ;;  %v140_v25 = vsel %vm88_vm0, %v46_v4, 0.0  ;;  %v185_v27 = vadd.f32 %v184_v19, %v183_v18 }
  0x1c   :  { %v103_v5 = vadd.f32 %v102_v38, %v101_v57  ;;  %v58_v28 = vld [vmem:[#allocation2 + $0x118] sm:$0xff]  ;;  %v142_v30 = vsel %vm88_vm0, %v47_v9, 0.0  ;;  %v163_v31 = vsel %vm88_vm0, %v55_v10, 0.0  ;;  %v188_v32 = vsel %vm88_vm0, %v65_v11, 0.0  ;;  %v67_v33 = vld [vmem:[#allocation2 + $0x160] sm:$0xff]  ;;  %v76_v35 = vld [vmem:[#allocation2 + $0x1a8] sm:$0xff] }
  0x1d   :  { %v133_v24 = vadd.f32 %v132_v2, %v131_v12  ;;  %v160_v26 = vadd.f32 %v159_v8, %v158_v14  ;;  %v75_v34 = vld [vmem:[#allocation2 + $0x1a0] sm:$0xff]  ;;  %v144_v37 = vsel %vm112_vm1, %v48_v16, 0.0  ;;  %v165_v42 = vsel %vm88_vm0, %v56_v21, 0.0  ;;  %v68_v44 = vld [vmem:[#allocation2 + $0x168] sm:$0xff]  ;;  %v77_v45 = vld [vmem:[#allocation2 + $0x1b0] sm:$0xff] }
  0x1e   :  { %v105_v17 = vadd.f32 %v104_v39, %v103_v5  ;;  %v187_v39 = vadd.f32 %v186_v20, %v185_v27  ;;  %v167_v43 = vsel %vm88_vm0, %v57_v22, 0.0  ;;  %v78_v46 = vld [vmem:[#allocation2 + $0x1b8] sm:$0xff]  ;;  %v169_v49 = vsel %vm88_vm0, %v58_v28, 0.0  ;;  %v59_v55 = vld [vmem:[#allocation2 + $0x120] sm:$0xff]  ;;  %v69_v56 = vld [vmem:[#allocation2 + $0x170] sm:$0xff] }
  0x1f   :  { %v135_v36 = vadd.f32 %v134_v6, %v133_v24  ;;  %v162_v38 = vadd.f32 %v161_v15, %v160_v26  ;;  %v192_v53 = vsel %vm88_vm0, %v67_v33, 0.0  ;;  %v214_v54 = vsel %vm88_vm0, %v75_v34, 0.0  ;;  %v79_v57 = vld [vmem:[#allocation2 + $0x1c0] sm:$0xff]  ;;  %v60_v3 = vld [vmem:[#allocation2 + $0x128] sm:$0xff]  ;;  %v70_v4 = vld [vmem:[#allocation2 + $0x178] sm:$0xff] }
  0x20   :  { %v107_v29 = vadd.f32 %v106_v40, %v105_v17  ;;  %v190_v40 = vsel %vm88_vm0, %v66_v23, 0.0  ;;  %v189_v50 = vadd.f32 %v188_v32, %v187_v39  ;;  %v194_v1 = vsel %vm88_vm0, %v68_v44, 0.0  ;;  %v80_v5 = vld [vmem:[#allocation2 + $0x1c8] sm:$0xff]  ;;  %v71_v14 = vld [vmem:[#allocation2 + $0x180] sm:$0xff]  ;;  %v81_v15 = vld [vmem:[#allocation2 + $0x1d0] sm:$0xff] }
  0x21   :  { %v137_v47 = vadd.f32 %v136_v7, %v135_v36  ;;  %v164_v48 = vadd.f32 %v163_v31, %v162_v38  ;;  %v217_v2 = vsel %vm88_vm0, %v77_v45, 0.0  ;;  %v171_v11 = vsel %vm88_vm0, %v59_v55, 0.0  ;;  %v72_v23 = vld [vmem:[#allocation2 + $0x188] sm:$0xff]  ;;  %v82_v24 = vld [vmem:[#allocation2 + $0x1d8] sm:$0xff]  ;;  %v73_v33 = vld [vmem:[#allocation2 + $0x190] sm:$0xff] }
  0x22   :  { %v109_v41 = vadd.f32 %v108_v51, %v107_v29  ;;  %v215_v51 = vsel %vm88_vm0, %v76_v35, 0.0  ;;  %v191_v61 = vadd.f32 %v190_v40, %v189_v50  ;;  %v196_v12 = vsel %vm88_vm0, %v69_v56, 0.0  ;;  %v83_v34 = vld [vmem:[#allocation2 + $0x1e0] sm:$0xff]  ;;  %v85_v50 = vld [vmem:[#allocation2 + $0x1f0] sm:$0xff] }
  0x23   :  { %v139_v59 = vadd.f32 %v138_v13, %v137_v47  ;;  %v166_v60 = vadd.f32 %v165_v42, %v164_v48  ;;  %v216_v62 = vadd.f32 %v215_v51, %v214_v54  ;;  %v61_v13 = vld [vmem:[#allocation2 + $0x130] sm:$0x1f]  ;;  %v173_v20 = vsel %vm88_vm0, %v60_v3, 0.0  ;;  %v74_v42 = vld [vmem:[#allocation2 + $0x198] sm:$0x1f] }
  0x24   :  { %v111_v52 = vadd.f32 %v110_v58, %v109_v41  ;;  %v219_v58 = vsel %vm88_vm0, %v78_v46, 0.0  ;;  %v193_v8 = vadd.f32 %v192_v53, %v191_v61  ;;  %v198_v21 = vsel %vm88_vm0, %v70_v4, 0.0 }
  0x25   :  { %v141_v6 = vadd.f32 %v140_v25, %v139_v59  ;;  %v168_v7 = vadd.f32 %v167_v43, %v166_v60  ;;  %v218_v9 = vadd.f32 %v217_v2, %v216_v62  ;;  %v223_v22 = vsel %vm88_vm0, %v80_v5, 0.0  ;;  %v84_v43 = vld [vmem:[#allocation2 + $0x1e8] sm:$0xff]  ;;  %v87_v2 = vld [vmem:[#allocation2 + $0x200] sm:$0x1f] }
  0x26   :  { %v114_v63 = vadd.f32 %v113_v0, %v111_v52  ;;  %v221_v0 = vsel %vm88_vm0, %v79_v57, 0.0  ;;  %v195_v18 = vadd.f32 %v194_v1, %v193_v8  ;;  %v175_v31 = vsel %vm112_vm1, %v61_v13, 0.0  ;;  %v86_v57 = vld [vmem:[#allocation2 + $0x1f8] sm:$0xff] }
  0x27   :  { %v143_v16 = vadd.f32 %v142_v30, %v141_v6  ;;  %v170_v17 = vadd.f32 %v169_v49, %v168_v7  ;;  %v220_v19 = vadd.f32 %v219_v58, %v218_v9  ;;  %v200_v30 = vsel %vm88_vm0, %v71_v14, 0.0 }
  0x28   :  { %v115_v10 = vrot.slane %v114_v63, 4  ;;  %v197_v27 = vadd.f32 %v196_v12, %v195_v18  ;;  %v225_v32 = vsel %vm88_vm0, %v81_v15, 0.0  ;;  %v202_v41 = vsel %vm88_vm0, %v72_v23, 0.0 }
  0x29   :  { %v145_v25 = vadd.f32 %v144_v37, %v143_v16  ;;  %v172_v26 = vadd.f32 %v171_v11, %v170_v17  ;;  %v222_v28 = vadd.f32 %v221_v0, %v220_v19  ;;  %v227_v37 = vsel %vm88_vm0, %v82_v24, 0.0 }
  0x2a   :  { %v116_v29 = vadd.f32 %v115_v10, %v114_v63  ;;  %v199_v38 = vadd.f32 %v198_v21, %v197_v27  ;;  %v204_v48 = vsel %vm88_vm0, %v73_v33, 0.0  ;;  %v229_v49 = vsel %vm88_vm0, %v83_v34, 0.0 }
  0x2b   :  { %v146_v35 = vrot.slane %v145_v25, 4  ;;  %v174_v36 = vadd.f32 %v173_v20, %v172_v26  ;;  %v224_v39 = vadd.f32 %v223_v22, %v222_v28  ;;  %v206_v55 = vsel %vm112_vm1, %v74_v42, 0.0 }
  0x2c   :  { %v201_v45 = vadd.f32 %v200_v30, %v199_v38  ;;  %v117_v47 = vrot.slane %v116_v29, 2  ;;  %v231_v56 = vsel %vm88_vm0, %v84_v43, 0.0  ;;  %v233_v1 = vsel %vm88_vm0, %v85_v50, 0.0 }
  0x2d   :  { %v147_v40 = vadd.f32 %v146_v35, %v145_v25  ;;  %v176_v44 = vadd.f32 %v175_v31, %v174_v36  ;;  %v226_v46 = vadd.f32 %v225_v32, %v224_v39  ;;  %v235_v5 = vsel %vm88_vm0, %v86_v57, 0.0 }
  0x2e   :  { %v203_v54 = vadd.f32 %v202_v41, %v201_v45  ;;  %v118_v62 = vadd.f32 %v117_v47, %v116_v29  ;;  %v237_v11 = vsel %vm112_vm1, %v87_v2, 0.0  ;;  %vm261_vm3 = vcmask 1041409  }
  0x2f   :  { %v148_v52 = vrot.slane %v147_v40, 2  ;;  %v177_v53 = vrot.slane %v176_v44, 4  ;;  %v228_v51 = vadd.f32 %v227_v37, %v226_v46  ;;  %vm252_vm4 = vcmask 1043459  }
  0x30   :  { %v205_v60 = vadd.f32 %v204_v48, %v203_v54  ;;  %v119_v9 = vrot.slane %v118_v62, 1  ;;  %vm254_vm5 = vcmask 1044484   ;;  %vm256_vm6 = vcmask 1045509  }
  0x31   :  { %v178_v59 = vadd.f32 %v177_v53, %v176_v44  ;;  %v230_v61 = vadd.f32 %v229_v49, %v228_v51  ;;  %v149_v63 = vadd.f32 %v148_v52, %v147_v40  ;;  %vm259_vm7 = vcmask 1040384  }
  0x32   :  { %v207_v3 = vadd.f32 %v206_v55, %v205_v60  ;;  %v120_v16 = vadd.f32 %v119_v9, %v118_v62  ;;  %vm267_vm8 = vcmask 1044480   ;;  %vm270_vm9 = vcmask 824320  }
  0x33   :  { %v179_v58 = vrot.slane %v178_v59, 2  ;;  %v232_v4 = vadd.f32 %v231_v56, %v230_v61  ;;  %v150_v10 = vrot.slane %v149_v63, 1  ;;  %vm450_vm14 = vmmov 1  }
  0x34   :  { %v208_v7 = vrot.slane %v207_v3, 4  ;;  %v451_v53 = vmov 0.0  }
  0x35   :  { %v180_v6 = vadd.f32 %v179_v58, %v178_v59  ;;  %v234_v8 = vadd.f32 %v233_v1, %v232_v4  ;;  %v151_v17 = vadd.f32 %v150_v10, %v149_v63 }
  0x36   :  { %v209_v12 = vadd.f32 %v208_v7, %v207_v3 }
  0x37   :  { %v236_v0 = vadd.f32 %v235_v5, %v234_v8  ;;  %v181_v13 = vrot.slane %v180_v6, 1  ;;  %v251_v23 = vsel %vm250_vm2, %v151_v17, %v120_v16  ;;  %v262_v24 = vsel %vm261_vm3, %v151_v17, %v120_v16 }
  0x38   :  { %v210_v14 = vrot.slane %v209_v12, 2 }
  0x39   :  { %v238_v15 = vadd.f32 %v237_v11, %v236_v0  ;;  %v182_v20 = vadd.f32 %v181_v13, %v180_v6 }
  0x3a   :  { %v211_v18 = vadd.f32 %v210_v14, %v209_v12 }
  0x3b   :  { %v239_v19 = vrot.slane %v238_v15, 4  ;;  %v253_v28 = vsel %vm252_vm4, %v182_v20, %v251_v23  ;;  %v263_v29 = vsel %vm250_vm2, %v182_v20, %v262_v24 }
  0x3c   :  { %v212_v21 = vrot.slane %v211_v18, 1 }
  0x3d   :  { %v240_v22 = vadd.f32 %v239_v19, %v238_v15 }
  0x3e   :  { %v213_v26 = vadd.f32 %v212_v21, %v211_v18 }
  0x3f   :  { %v241_v25 = vrot.slane %v240_v22, 2 }
  0x40   :  { %v255_v30 = vsel %vm254_vm5, %v213_v26, %v253_v28  ;;  %v264_v32 = vsel %vm252_vm4, %v213_v26, %v263_v29 }
  0x41   :  { %v242_v27 = vadd.f32 %v241_v25, %v240_v22 }
  0x43   :  { %v243_v31 = vrot.slane %v242_v27, 1 }
  0x45   :  { %v244_v33 = vadd.f32 %v243_v31, %v242_v27 }
  0x47   :  { %v257_v34 = vsel %vm256_vm6, %v244_v33, %v255_v30  ;;  %v265_v35 = vsel %vm254_vm5, %v244_v33, %v264_v32 }
  0x48   :  { %v260_v36 = vsel %vm259_vm7, 0.0, %v257_v34  ;;  %v268_v38 = vsel %vm267_vm8, %v265_v35, 0.0 }
  0x49   :  { %v531_v39 = vadd.f32 %v268_v38, %v260_v36 }
  0x4b   :  { %v271_v41 = vsel %vm270_vm9, %v531_v39, -inf }
  0x4c   :  { %272 = vmax.xlane.f32.xlu0 %v271_v41 }
  0xd5   :  { %v273_v37 = vpop.xlane.xlu0 %272 }
  0xd6   :  { %v274_v42 = vrot.slane %v273_v37, 4 }
  0xd8   :  { %v275_v43 = vmax.f32 %v273_v37, %v274_v42 }
  0xda   :  { %v276_v40 = vrot.slane %v275_v43, 2 }
  0xdc   :  { %v277_v44 = vmax.f32 %v275_v43, %v276_v40 }
  0xde   :  { %v278_v45 = vrot.slane %v277_v44, 1 }
  0xe0   :  { %v279_v46 = vmax.f32 %v277_v44, %v278_v45 }
  0xe2   :  { %405 = vpush %v279_v46 }
 0x113   :  { %s406_s0 = spop %405 }
 0x114   :  { %s535_s13 = smul.f32 0.11111111, %s406_s0 }
 0x116   :  { %s284_s14 = smul.f32 0.0, %s535_s13  ;;  %v287_v47 = vstv %s535_s13 }
 0x117   :  { %s294_s15 = smul.f32 2.0, %s535_s13  ;;  %vm288_vm11 = vcmp.lt.f32.partialorder %v531_v39, %v287_v47  ;;  %vm295_vm0 = vcmp.gt.f32.partialorder %v531_v39, %v287_v47 }
 0x118   :  { %v285_v48 = vstv %s284_s14  ;;  %s303_s16 = smul.f32 3.0, %s535_s13 }
 0x119   :  { %vm286_vm10 = vcmp.gt.f32.partialorder %v531_v39, %v285_v48  ;;  %v296_v49 = vstv %s294_s15  ;;  %s312_s17 = smul.f32 4.0, %s535_s13 }
 0x11a   :  { %vm289_vm12 = vmxor %vm286_vm10, %vm288_vm11  ;;  %vm297_vm13 = vcmp.lt.f32.partialorder %v531_v39, %v296_v49  ;;  %v305_v50 = vstv %s303_s16  ;;  %s321_s18 = smul.f32 5.0, %s535_s13  ;;  %vm304_vm1 = vcmp.gt.f32.partialorder %v531_v39, %v296_v49 }
 0x11b   :  { %vm290_vm15 = vmxor %vm289_vm12, %vm450_vm14  ;;  %vm306_vm2 = vcmp.lt.f32.partialorder %v531_v39, %v305_v50  ;;  %v314_v52 = vstv %s312_s17  ;;  %s330_s19 = smul.f32 6.0, %s535_s13  ;;  %vm313_vm5 = vcmp.gt.f32.partialorder %v531_v39, %v305_v50 }
 0x11c   :  { %v396_v54 = vsel %vm290_vm15, 1.0, %v451_v53  ;;  %vm298_vm3 = vmxor %vm295_vm0, %vm297_vm13  ;;  %v323_v51 = vstv %s321_s18  ;;  %s339_s20 = smul.f32 7.0, %s535_s13  ;;  %vm315_vm6 = vcmp.lt.f32.partialorder %v531_v39, %v314_v52  ;;  %vm322_vm10 = vcmp.gt.f32.partialorder %v531_v39, %v314_v52 }
 0x11d   :  { %vm299_vm4 = vmxor %vm298_vm3, %vm450_vm14  ;;  %v332_v56 = vstv %s330_s19  ;;  %s348_s21 = smul.f32 8.0, %s535_s13  ;;  %vm324_vm11 = vcmp.lt.f32.partialorder %v531_v39, %v323_v51  ;;  %vm331_vm15 = vcmp.gt.f32.partialorder %v531_v39, %v323_v51 }
 0x11e   :  { %v397_v55 = vsel %vm299_vm4, 1.0, %v451_v53  ;;  %vm307_vm7 = vmxor %vm304_vm1, %vm306_vm2  ;;  %v341_v60 = vstv %s339_s20  ;;  %s357_s22 = smul.f32 9.0, %s535_s13  ;;  %vm333_vm0 = vcmp.lt.f32.partialorder %v531_v39, %v332_v56  ;;  %vm340_vm3 = vcmp.gt.f32.partialorder %v531_v39, %v332_v56 }
 0x11f   :  { %v302_v57 = vadd.f32 %v397_v55, %v396_v54  ;;  %vm308_vm8 = vmxor %vm307_vm7, %vm450_vm14  ;;  %v350_v63 = vstv %s348_s21  ;;  %vm342_vm4 = vcmp.lt.f32.partialorder %v531_v39, %v341_v60  ;;  %vm349_vm7 = vcmp.gt.f32.partialorder %v531_v39, %v341_v60 }
 0x120   :  { %v398_v59 = vsel %vm308_vm8, 1.0, %v451_v53  ;;  %vm316_vm12 = vmxor %vm313_vm5, %vm315_vm6  ;;  %v359_v58 = vstv %s357_s22  ;;  %vm351_vm8 = vcmp.lt.f32.partialorder %v531_v39, %v350_v63 }
 0x121   :  { %v311_v61 = vadd.f32 %v398_v59, %v302_v57  ;;  %vm317_vm13 = vmxor %vm316_vm12, %vm450_vm14  ;;  %vm358_vm12 = vcmp.gt.f32.partialorder %v531_v39, %v350_v63 }
 0x122   :  { %v399_v62 = vsel %vm317_vm13, 1.0, %v451_v53  ;;  %vm325_vm1 = vmxor %vm322_vm10, %vm324_vm11  ;;  %vm360_vm13 = vcmp.lt.f32.partialorder %v531_v39, %v359_v58 }
 0x123   :  { %v320_v1 = vadd.f32 %v399_v62, %v311_v61  ;;  %vm326_vm2 = vmxor %vm325_vm1, %vm450_vm14 }
 0x124   :  { %v400_v2 = vsel %vm326_vm2, 1.0, %v451_v53  ;;  %vm334_vm5 = vmxor %vm331_vm15, %vm333_vm0 }
 0x125   :  { %v329_v3 = vadd.f32 %v400_v2, %v320_v1  ;;  %vm335_vm6 = vmxor %vm334_vm5, %vm450_vm14 }
 0x126   :  { %v401_v4 = vsel %vm335_vm6, 1.0, %v451_v53  ;;  %vm343_vm10 = vmxor %vm340_vm3, %vm342_vm4 }
 0x127   :  { %v338_v5 = vadd.f32 %v401_v4, %v329_v3  ;;  %vm344_vm11 = vmxor %vm343_vm10, %vm450_vm14 }
 0x128   :  { %v402_v6 = vsel %vm344_vm11, 1.0, %v451_v53  ;;  %vm352_vm1 = vmxor %vm349_vm7, %vm351_vm8 }
 0x129   :  { %v347_v7 = vadd.f32 %v402_v6, %v338_v5  ;;  %vm353_vm15 = vmxor %vm352_vm1, %vm450_vm14 }
 0x12a   :  { %v403_v8 = vsel %vm353_vm15, 1.0, %v451_v53  ;;  %vm361_vm0 = vmxor %vm358_vm12, %vm360_vm13 }
 0x12b   :  { %v356_v9 = vadd.f32 %v403_v8, %v347_v7  ;;  %vm362_vm2 = vmxor %vm361_vm0, %vm450_vm14 }
 0x12c   :  { %v404_v10 = vsel %vm362_vm2, 1.0, %v451_v53 }
 0x12d   :  { %v365_v11 = vadd.f32 %v404_v10, %v356_v9 }
 0x12f   :  { %v366_v12 = vsel %vm270_vm9, %v365_v11, 0.0 }
 0x130   :  { %367 = vadd.xlane.f32.xlu0 %v366_v12 }
 0x1b9   :  { %v368_v0 = vpop.xlane.xlu0 %367 }
 0x1ba   :  { %v369_v13 = vrot.slane %v368_v0, 4 }
 0x1bc   :  { %v370_v14 = vadd.f32 %v369_v13, %v368_v0 }
 0x1be   :  { %v371_v15 = vrot.slane %v370_v14, 2 }
 0x1c0   :  { %v372_v16 = vadd.f32 %v371_v15, %v370_v14 }
 0x1c2   :  { %v373_v17 = vrot.slane %v372_v16, 1 }
 0x1c4   :  { %v374_v18 = vadd.f32 %v373_v17, %v372_v16 }
 0x1c6   :  { %407 = vpush %v374_v18 }
 0x1f7   :  { %s408_s23 = spop %407 }
 0x1f8   :  { %s378_s24 = smul.f32 0.0016501651, %s408_s23 }
 0x1fa   :  { %s379_s25 = sadd.f32 9.0, %s378_s24 }
 0x1fc   :  { %381 = sst [smem:[#allocation5]] %s379_s25 }
 0x1fd   :  { %389 = dma.smem_to_hbm %s452_s26, 16, %s579_s1, [#allocation4]  }
 0x1fe   :  { %445 = dma.done.wait [#allocation4], 16  }
 0x1ff   :  { %446 = vsyncadd [#allocation4], 4294967280 }
 0x200   :  { %393 = sfence }
 0x201   :  { %394 = vsyncpa [#allocation3], 1 }
 0x202   :  { %395 = vsyncpa [#allocation4], 1 }

</bundles_post_ra>
